<compile_context>
chip_gen: v5e
topology: v5e:2x2
jax: 0.10.0
libtpu: 0.0.40
codegen_flags: <defaults>
</compile_context>

<pallas_src>
import math
import functools

import jax
import jax.numpy as jnp
from jax.experimental import pallas as pl
from jax.experimental.pallas import tpu as pltpu


# ----------------------------------------------------------------------------
# Parameter setup (fixed buffer in the PyTorch module, built once in plain JAX)
# ----------------------------------------------------------------------------
def make_positional_encoding(seq_len: int, d_model: int) -> jnp.ndarray:
    """Deterministic sin/cos table, identical math to the PyTorch __init__."""
    position = jnp.arange(seq_len, dtype=jnp.float32)[:, None]            # (S, 1)
    denominator = jnp.exp(
        jnp.arange(0, d_model, 2, dtype=jnp.float32) * (-math.log(10000.0) / d_model)
    )                                                                      # (D/2,)
    pe = jnp.zeros((seq_len, d_model), dtype=jnp.float32)
    pe = pe.at[:, 0::2].set(jnp.sin(position * denominator))
    pe = pe.at[:, 1::2].set(jnp.cos(position * denominator))
    return pe                                                              # (S, D)


# ----------------------------------------------------------------------------
# Kernels
# ----------------------------------------------------------------------------
def _pe_add_kernel(x_ref, pe_ref, o_ref):
    # x_ref/o_ref: (TS, D) (batch dim squeezed); pe_ref: (TS, D)
    o_ref[...] = (x_ref[...] + pe_ref[...]).astype(o_ref.dtype)


def _dropout_threshold(dropout_prob: float) -> jnp.uint32:
    # Inverted dropout via unsigned threshold compare: P(bits >= p*2^32) = 1 - p.
    return jnp.uint32(min(int(round(dropout_prob * 2.0 ** 32)), 2 ** 32 - 1))


def _pe_dropout_hw_kernel(seed_ref, x_ref, pe_ref, o_ref, *, dropout_prob: float):
    """Main path: TPU hardware PRNG -> no per-element VALU hash work."""
    s = pl.program_id(0)
    b = pl.program_id(1)
    # Unique stream per (seed, seq-tile, batch) grid step -> every step is
    # independent, so both grid axes stay "parallel" for v7x megacore sharding.
    pltpu.prng_seed(seed_ref[0], s, b)

    y = x_ref[...] + pe_ref[...]                                           # (TS, D)
    raw = pltpu.prng_random_bits(y.shape)
    bits = raw if str(raw.dtype) == "uint32" else pltpu.bitcast(raw, jnp.uint32)

    keep = bits >= _dropout_threshold(dropout_prob)
    scale = jnp.asarray(1.0 / (1.0 - dropout_prob), dtype=y.dtype)
    o_ref[...] = jnp.where(keep, y * scale, jnp.zeros_like(y)).astype(o_ref.dtype)


def _pe_dropout_sw_kernel(seed_ref, x_ref, pe_ref, o_ref, *,
                          dropout_prob: float, seq_len: int,
                          tile_s: int, d_model: int):
    """Fallback path (e.g. interpret mode): cheap stateless counter hash.

    The per-step offset is folded into a single scalar `base` (scalar unit,
    free); the vector path is one fused iota expression plus a single
    odd-constant multiply and one xorshift round.
    """
    s = pl.program_id(0)
    b = pl.program_id(1)

    y = x_ref[...] + pe_ref[...]                                           # (TS, D)

    base = ((b * seq_len + s * tile_s) * d_model).astype(jnp.uint32)
    base = base + seed_ref[0].astype(jnp.uint32) * jnp.uint32(0x9E3779B9)

    row = jax.lax.broadcasted_iota(jnp.int32, y.shape, 0).astype(jnp.uint32)
    col = jax.lax.broadcasted_iota(jnp.int32, y.shape, 1).astype(jnp.uint32)
    bits = base + row * jnp.uint32(d_model) + col
    bits = bits * jnp.uint32(0x9E3779B1)      # golden-ratio odd multiplier (bijective mix)
    bits = bits ^ (bits >> 16)                # single xorshift round

    keep = bits >= _dropout_threshold(dropout_prob)
    scale = jnp.asarray(1.0 / (1.0 - dropout_prob), dtype=y.dtype)
    o_ref[...] = jnp.where(keep, y * scale, jnp.zeros_like(y)).astype(o_ref.dtype)


# ----------------------------------------------------------------------------
# Tiling
# ----------------------------------------------------------------------------
_TARGET_BLOCK_BYTES = 2 * 1024 * 1024   # ~2 MiB/input block: ~85% HBM roofline, and
                                        # ~6x that (double-buffered x/pe/out) stays
                                        # well under every generation's VMEM budget.
_VMEM_LIMIT_BYTES = 32 * 1024 * 1024    # headroom even on v7x (64 MiB physical).


def _choose_seq_tile(seq_len: int, d_model: int, itemsize: int, batch: int) -> int:
    """D-/dtype-aware sequence tile: ~2 MiB blocks, multiple of 8 rows."""
    row_bytes = max(1, d_model * itemsize)
    ts = _TARGET_BLOCK_BYTES // row_bytes
    ts = max(8, (ts // 8) * 8)
    if ts >= seq_len:
        ts = seq_len                       # whole sequence as one (full-dim) block

    # v7x has 2 TensorCores: make sure the (seq_tiles, batch) grid has >= 2 steps.
    if batch * pl.cdiv(seq_len, ts) < 2 and seq_len > 8:
        half = (((seq_len + 1) // 2) + 7) // 8 * 8
        if half < seq_len:
            ts = half
    return ts


# ----------------------------------------------------------------------------
# Wrapper
# ----------------------------------------------------------------------------
def positional_encoding_forward(x, pe, *, dropout_prob: float, training: bool,
                                seed: int = 0, seq_block: int | None = None,
                                use_hw_prng: bool = True,
                                force_pallas_eval: bool = False):
    """x: (B, S, D); pe: (S_max, D). Returns dropout(x + pe[:S]) of shape (B, S, D)."""
    B, S, D = x.shape
    pe = pe[:S, :].astype(x.dtype)     # mirrors self.positional_encoding[:, :x.shape[1], :]

    apply_dropout = bool(training) and float(dropout_prob) > 0.0
    if not apply_dropout and not force_pallas_eval:
        # Eval / p == 0: plain JAX add. XLA fuses it with producer/consumer ops,
        # avoiding the extra HBM read+write a standalone kernel would cost.
        return (x + pe[None, :, :]).astype(x.dtype)

    ts = seq_block if seq_block is not None else _choose_seq_tile(S, D, x.dtype.itemsize, B)
    grid = (pl.cdiv(S, ts), B)         # S outer (slow): pe block refetched only S/ts times
    out_shape = jax.ShapeDtypeStruct((B, S, D), x.dtype)
    compiler_params = pltpu.CompilerParams(
        dimension_semantics=("parallel", "parallel"),
        vmem_limit_bytes=_VMEM_LIMIT_BYTES,
    )

    if not apply_dropout:
        return pl.pallas_call(
            _pe_add_kernel,
            out_shape=out_shape,
            grid_spec=pltpu.PrefetchScalarGridSpec(
                num_scalar_prefetch=0,
                grid=grid,
                in_specs=[
                    pl.BlockSpec((None, ts, D), lambda s, b: (b, s, 0)),   # x (batch squeezed)
                    pl.BlockSpec((ts, D), lambda s, b: (s, 0)),            # pe
                ],
                out_specs=pl.BlockSpec((None, ts, D), lambda s, b: (b, s, 0)),
            ),
            compiler_params=compiler_params,
        )(x, pe)

    seed_arr = jnp.asarray([seed], dtype=jnp.int32)
    x_spec = pl.BlockSpec((None, ts, D), lambda s, b, seed_ref: (b, s, 0))
    pe_spec = pl.BlockSpec((ts, D), lambda s, b, seed_ref: (s, 0))
    out_spec = pl.BlockSpec((None, ts, D), lambda s, b, seed_ref: (b, s, 0))

    def run(kernel):
        return pl.pallas_call(
            kernel,
            out_shape=out_shape,
            grid_spec=pltpu.PrefetchScalarGridSpec(
                num_scalar_prefetch=1,                                     # seed -> SMEM
                grid=grid,
                in_specs=[x_spec, pe_spec],
                out_specs=out_spec,
            ),
            compiler_params=compiler_params,
        )(seed_arr, x, pe)

    if use_hw_prng:
        hw_kernel = functools.partial(_pe_dropout_hw_kernel,
                                      dropout_prob=float(dropout_prob))
        try:
            return run(hw_kernel)
        except Exception:
            # Stateful PRNG primitives have no lowering in some interpret-mode
            # environments; fall back to the cheap software hash.
            pass

    sw_kernel = functools.partial(_pe_dropout_sw_kernel,
                                  dropout_prob=float(dropout_prob),
                                  seq_len=S, tile_s=ts, d_model=D)
    return run(sw_kernel)


# ----------------------------------------------------------------------------
# Test
# ----------------------------------------------------------------------------
if __name__ == "__main__":
    dropout_prob = 0.1
    key = jax.random.PRNGKey(0)
    k1, k2, k3 = jax.random.split(key, 3)

    # --- small shape (lane-dense D=128) -------------------------------------
    B, S, D = 2, 8, 128
    x = jax.random.normal(k1, (B, S, D), dtype=jnp.float32)
    pe = make_positional_encoding(S, D)
    ref = x + pe[None, :, :]

    # Eval mode, fused plain-JAX path.
    out_eval = positional_encoding_forward(x, pe, dropout_prob=dropout_prob,
                                           training=False)
    jax.block_until_ready(out_eval)
    assert out_eval.shape == (B, S, D)
    assert jnp.allclose(out_eval, ref, atol=1e-6), "eval-mode mismatch"

    # Eval mode through the Pallas add kernel (forced): identical result.
    out_eval_pallas = positional_encoding_forward(x, pe, dropout_prob=dropout_prob,
                                                  training=False,
                                                  force_pallas_eval=True)
    jax.block_until_ready(out_eval_pallas)
    assert jnp.allclose(out_eval_pallas, ref, atol=1e-6), "pallas eval-mode mismatch"

    # Training mode: every output element is either 0 (dropped) or ref/(1-p).
    out_train = positional_encoding_forward(x, pe, dropout_prob=dropout_prob,
                                            training=True, seed=123)
    jax.block_until_ready(out_train)
    assert out_train.shape == (B, S, D)
    expected = ref / (1.0 - dropout_prob)
    ok = jnp.logical_or(out_train == 0.0,
                        jnp.isclose(out_train, expected, rtol=1e-5, atol=1e-5))
    assert bool(jnp.all(ok)), "training-mode values are not {0, scaled}"

    # --- non-divisible sequence length: partial boundary tile via cdiv grid ---
    B1, S1, D1 = 2, 24, 128
    x1 = jax.random.normal(k2, (B1, S1, D1), dtype=jnp.float32)
    pe1 = make_positional_encoding(S1, D1)
    ref1 = x1 + pe1[None, :, :]
    out1 = positional_encoding_forward(x1, pe1, dropout_prob=dropout_prob,
                                       training=False, force_pallas_eval=True,
                                       seq_block=16)          # 24 = 16 + 8 (partial tile)
    jax.block_until_ready(out1)
    assert jnp.allclose(out1, ref1, atol=1e-6), "partial-tile eval mismatch"

    out1_train = positional_encoding_forward(x1, pe1, dropout_prob=dropout_prob,
                                             training=True, seed=5, seq_block=16)
    jax.block_until_ready(out1_train)
    exp1 = ref1 / (1.0 - dropout_prob)
    ok1 = jnp.logical_or(out1_train == 0.0,
                         jnp.isclose(out1_train, exp1, rtol=1e-5, atol=1e-5))
    assert bool(jnp.all(ok1)), "partial-tile training values are not {0, scaled}"

    # --- larger shape: exercises auto tile choice + dropout statistics -------
    B2, S2, D2 = 2, 1024, 128
    x2 = jax.random.normal(k3, (B2, S2, D2), dtype=jnp.float32)
    pe2 = make_positional_encoding(S2, D2)

    out2_eval = positional_encoding_forward(x2, pe2, dropout_prob=dropout_prob,
                                            training=False, force_pallas_eval=True)
    jax.block_until_ready(out2_eval)
    assert jnp.allclose(out2_eval, x2 + pe2[None, :, :], atol=1e-6), "tiled eval mismatch"

    out2_train = positional_encoding_forward(x2, pe2, dropout_prob=dropout_prob,
                                             training=True, seed=7)
    jax.block_until_ready(out2_train)
    drop_frac = float(jnp.mean((out2_train == 0.0).astype(jnp.float32)))
    assert 0.07 < drop_frac < 0.13, f"dropout rate {drop_frac} far from p=0.1"
    # Masks must differ across batch items (per-grid-step PRNG seeding works).
    assert not bool(jnp.array_equal(out2_train[0] == 0.0, out2_train[1] == 0.0)), \
        "identical dropout masks across batch"

    # --- bf16 smoke test (HBM-bound kernel: bf16 is the biggest caller-side lever)
    xb = x2.astype(jnp.bfloat16)
    outb = positional_encoding_forward(xb, pe2, dropout_prob=dropout_prob,
                                       training=True, seed=11)
    jax.block_until_ready(outb)
    assert outb.dtype == jnp.bfloat16 and outb.shape == (B2, S2, D2)
    refb = (xb + pe2.astype(jnp.bfloat16)[None, :, :]).astype(jnp.float32)
    expb = refb / (1.0 - dropout_prob)
    okb = jnp.logical_or(outb.astype(jnp.float32) == 0.0,
                         jnp.isclose(outb.astype(jnp.float32), expb, rtol=2e-2, atol=2e-2))
    assert bool(jnp.all(okb)), "bf16 training values are not {0, scaled}"

    print("KERNEL_OK")
</pallas_src>

<mosaic_0001>
module attributes {stable_mosaic.version = 11 : i64} {
  func.func @_pe_add_kernel(%arg0: i32, %arg1: i32, %arg2: memref<1x8x128xf32, #tpu.memory_space<vmem>>, %arg3: memref<8x128xf32, #tpu.memory_space<vmem>>, %arg4: memref<1x8x128xf32, #tpu.memory_space<vmem>>) attributes {dimension_semantics = [#tpu.dimension_semantics<parallel>, #tpu.dimension_semantics<parallel>], iteration_bounds = array<i64: 1, 2>, scalar_prefetch = 0 : i64, scratch_operands = 0 : i64, tpu.core_type = #tpu.core_type<tc>, window_params = [{transform_indices = @transform_0, window_bounds = array<i64: 1, 8, 128>}, {transform_indices = @transform_1, window_bounds = array<i64: 8, 128>}, {transform_indices = @transform_2, window_bounds = array<i64: 1, 8, 128>}]} {
    %c0 = arith.constant 0 : index
    %c0_0 = arith.constant 0 : index
    %c0_1 = arith.constant 0 : index
    %0 = vector.load %arg2[%c0, %c0_0, %c0_1] : memref<1x8x128xf32, #tpu.memory_space<vmem>>, vector<1x8x128xf32>
    %1 = vector.shape_cast %0 : vector<1x8x128xf32> to vector<8x128xf32>
    %c0_2 = arith.constant 0 : index
    %c0_3 = arith.constant 0 : index
    %2 = vector.load %arg3[%c0_2, %c0_3] : memref<8x128xf32, #tpu.memory_space<vmem>>, vector<8x128xf32>
    %3 = arith.addf %1, %2 : vector<8x128xf32>
    %c0_4 = arith.constant 0 : index
    %c0_5 = arith.constant 0 : index
    %c0_6 = arith.constant 0 : index
    %4 = vector.load %arg4[%c0_4, %c0_5, %c0_6] : memref<1x8x128xf32, #tpu.memory_space<vmem>>, vector<1x8x128xf32>
    %5 = vector.shape_cast %4 : vector<1x8x128xf32> to vector<8x128xf32>
    %6 = vector.shape_cast %3 : vector<8x128xf32> to vector<1x8x128xf32>
    tpu.vector_store %arg4[%c0_4, %c0_5, %c0_6], %6 {strides = array<i32>} : memref<1x8x128xf32, #tpu.memory_space<vmem>>, vector<1x8x128xf32>,
    return
  }
  func.func @transform_0(%arg0: i32, %arg1: i32) -> (i32, i32, i32) {
    %c0_i32 = arith.constant 0 : i32
    %c0_i32_0 = arith.constant 0 : i32
    return %arg1, %arg0, %c0_i32 : i32, i32, i32
  }
  func.func @transform_1(%arg0: i32, %arg1: i32) -> (i32, i32) {
    %c0_i32 = arith.constant 0 : i32
    %c0_i32_0 = arith.constant 0 : i32
    return %arg0, %c0_i32 : i32, i32
  }
  func.func @transform_2(%arg0: i32, %arg1: i32) -> (i32, i32, i32) {
    %c0_i32 = arith.constant 0 : i32
    %c0_i32_0 = arith.constant 0 : i32
    return %arg1, %arg0, %c0_i32 : i32, i32, i32
  }
}

</mosaic_0001>

<bundles_post_ra>
// kernel: tpu_custom_call.1
= control target key start
LH: loop header
LB: loop body
LE: loop exit
PB: predicated region body
PF: predicated region fallthrough
CT: control target
= control target key end

     0   :  { %7 = vsyncpa [#allocation3], 0  ;;  %s714_s0 = inlined_call_operand.hbm [shape: f32[2,8,128], index: 0, kind: input, shape index: {}]   ;;  %s715_s1 = inlined_call_operand.hbm [shape: f32[8,128], index: 1, kind: input, shape index: {}]   ;;  %s716_s2 = inlined_call_operand.hbm [shape: f32[2,8,128], index: 2, kind: output, shape index: {}]  }
   0x1   :  { %9 = vsyncpa [#allocation3 + $0x1], 0 }
   0x2   :  { %10 = vsyncpa [#allocation6], 0 }
   0x3   :  { %11 = vsyncpa [#allocation4], 0 }
   0x4   :  { %13 = vsyncpa [#allocation4 + $0x1], 0  ;;  %s565_s9 = smov 0   ;;  %s567_s10 = smov 0  }
   0x5   :  { %s569_s11 = smov 0   ;;  %s571_s12 = smov 0  }
   0x6   :  { %s573_s13 = smov 0   ;;  %s575_s14 = smov 0  }
   0x7 LB: > { %s313_s15 = sadd.s32 4294967295, %s547_s14   ;;  %s314_s16 = sadd.s32 4294967294, %s547_s14   ;;  %s547_s14 = sphi %s575_s14, %s19_s14   ;;  %s543_s13 = sphi %s573_s13, %s728_s13   ;;  %s539_s12 = sphi %s571_s12, %s727_s12   ;;  %s535_s11 = sphi %s569_s11, %s726_s11   ;;  %s531_s10 = sphi %s567_s10, %s725_s10   ;;  %s527_s9 = sphi %s565_s9, %s724_s9  }
   0x8   : > { %p53_p0 = scmp.ne.s32.totalorder %s531_s10, %s527_s9  ;;  %p599_p1 = scmp.eq.s32.totalorder %s313_s15, 0 }
   0x9   : > { %p603_p2 = scmp.eq.s32.totalorder %s313_s15, 1  ;;  %p111_p3 = scmp.eq.s32.totalorder %s314_s16, 1 }
   0xa   : > { %p609_p4 = por %p599_p1, %p53_p0  ;;  %p315_p5 = scmp.ge.s32.totalorder %s547_s14, 1 }
   0xb   : > { %p614_p6 = por %p111_p3, %p53_p0  ;;  %p118_p7 = scmp.lt.s32.totalorder %s547_s14, 3 }
   0xc   : > { %s132_s23 = sshll.u32 %s715_s1, 4  ;;  %p317_p9 = scmp.ge.s32.totalorder %s547_s14, 2  ;;  %s133_s23 = int_to_ptr.hbm [resolvable:$true] %s132_s23 }
   0xd   : > { %p622_p8 = pnand %p315_p5, %p118_p7  ;;  %s549_s25 = smov [#allocation5]  }
   0xe   : > { %s134_s26 = sshll.u32 %s549_s25, 4  ;;  %s28_s27 = sadd.s32 1, %s543_s13  ;;  %s135_s26 = int_to_ptr.vmem [resolvable:$true] %s134_s26 }
   0xf   : > { %p336_p10 = pneg %p622_p8  ;;  %p29_p12 = scmp.ge.s32.totalorder %s28_s27, 2 }
  0x10   : > { %s40_s28 = sadd.s32 1, %s535_s11  ;;  %p47_p13 = scmp.ne.s32.totalorder %s535_s11, %s531_s10 }
  0x11   : > { %p337_p11 = pnand %p336_p10, %p599_p1  ;;  %p48_p0 = scmp.eq.s32.totalorder %s547_s14, 0 }
  0x12   : > { %s730_s27 = smov (%p29_p12, %s28_s27), 0  ;;  %p644_p5 = por %p603_p2, %p47_p13 }
  0x13   : > { %339 = dma.hbm_to_vmem [thread:$0]  (!%p337_p11), %s133_s23, 128, %s135_s26, [#allocation6]  }
  0x14   : > { %p638_p3 = por %p48_p0, %p47_p13  ;;  %s35_s3 = ssub.s32 %s543_s13, %s730_s27 }
  0x15   : > { %p349_p7 = scmp.lt.s32.totalorder %s547_s14, 2  ;;  %p38_p10 = scmp.eq.s32.totalorder %s35_s3, 0 }
  0x16   : > { %s145_s4 = sand.u32 1, %s535_s11   ;;  %s319_s7 = sshll.u32 %s543_s13, 3 }
  0x17   : > { %s318_s5 = sshll.u32 %s145_s4, 3  ;;  %s154_s16 = scalar_lea.hbm %s714_s0, %s319_s7 }
  0x18   : > { %s653_s6 = scalar_select %p38_p10, %s535_s11, %s40_s28  }
  0x19   : > { %s149_s21 = scalar_lea.vmem [#allocation2], %s318_s5  ;;  %s156_s18 = sshll.u32 %s154_s16, 4  ;;  %s157_s18 = int_to_ptr.hbm [resolvable:$true] %s156_s18 }
  0x1a   : > { %s158_s22 = sshll.u32 %s149_s21, 4  ;;  %p341_p2 = pnand %p349_p7, %p638_p3  ;;  %s159_s22 = int_to_ptr.vmem [resolvable:$true] %s158_s22 }
  0x1b   : > { %s146_s23 = scalar_lea.sflag [#allocation3], %s145_s4  ;;  %167 = sbr.rel (%p622_p8) target bundleno = 50 (0x32), region = 28 }
  0x1c   : > { %343 = dma.hbm_to_vmem [thread:$0]  (!%p341_p2), %s157_s18, 128, %s159_s22, %s146_s23  }
  0x1d   : > { %s664_s25 = sand.u32 (!%p622_p8), 1, %s531_s10  }
  0x1e   : > { %s321_s26 = sshll.u32 (!%p622_p8), %s664_s25, 3  ;;  %s170_s28 = scalar_lea.sflag (!%p622_p8), [#allocation3], %s664_s25 }
  0x1f   : > { %s173_s3 = scalar_lea.vmem (!%p622_p8), [#allocation2], %s321_s26 }
  0x20   : > { %514 = dma.done.wait (%p609_p4), %s170_s28, 128  }
  0x21   : > { %516 = vsyncadd (%p609_p4), %s170_s28, 4294967168 }
  0x22   : > { %518 = dma.done.wait (%p599_p1), [#allocation6], 128  }
  0x23   : > { %520 = vsyncadd (%p599_p1), [#allocation6], 4294967168  ;;  %s325_s24 = sshll.u32 %s539_s12, 3  ;;  %s199_s7 = scalar_lea.vmem [#allocation7], %s321_s26  ;;  %v200_v0 = vld [vmem:[%s173_s3] sm:$0xff]  ;;  %v201_v1 = vld [vmem:[#allocation5] sm:$0xff] }
  0x24   : > { %s216_s5 = scalar_lea.hbm %s716_s2, %s325_s24  ;;  %s218_s8 = sshll.u32 %s199_s7, 4  ;;  %v202_v2 = vadd.f32 %v201_v1, %v200_v0  ;;  %s219_s8 = int_to_ptr.vmem [resolvable:$true] %s218_s8 }
  0x25   : > { %s220_s15 = sshll.u32 %s216_s5, 4  ;;  %s205_s19 = scalar_lea.sflag [#allocation4], %s664_s25  ;;  %s221_s15 = int_to_ptr.hbm [resolvable:$true] %s220_s15 }
  0x26   : > { %203 = vst [vmem:[%s199_s7] sm:$0xff] %v202_v2  ;;  %s475_s17 = sshra.s32 %s221_s15, 4  ;;  %s481_s22 = scalar_lea.hbm %s716_s2, 16  ;;  %s476_s17 = int_to_ptr.hbm [resolvable:$true] %s475_s17 }
  0x27   : > { %s477_s16 = scalar_lea.hbm %s476_s17, 8  ;;  %p482_p11 = scmp.lt.s32.totalorder %s476_s17, %s716_s2 }
  0x28   : > { %p478_p1 = scmp.ne.s32.totalorder %s476_s17, %s477_s16  ;;  %p483_p12 = scmp.lt.s32.totalorder %s481_s22, %s477_s16 }
  0x2a   : > { %p479_p4 = pnand %p478_p1, %p644_p5  ;;  %p484_p13 = por %p483_p12, %p482_p11 }
  0x2c   : > { %p480_p8 = pneg %p479_p4 }
  0x2e   : > { %p485_p0 = pnand %p484_p13, %p480_p8 }
  0x30   : > { %488 = shalt.err (!%p485_p0)
}
  0x31   : > { %334 = dma.vmem_to_hbm [thread:$0]  (%p644_p5), %s219_s8, 128, %s221_s15, %s205_s19  }
  0x32 PF: > { %s232_s25 = sand.u32 1, %s527_s9   ;;  %p345_p3 = pnand %p317_p9, %p614_p6 }
  0x33   : > { %s233_s26 = scalar_lea.sflag [#allocation4], %s232_s25 }
  0x34   : > { %p346_p7 = pneg %p345_p3 }
  0x36   : > { %522 = dma.done.wait (%p346_p7), %s233_s26, 128  }
  0x37   : > { %524 = vsyncadd (%p346_p7), %s233_s26, 4294967168  ;;  %s19_s14 = sadd.s32 1, %s547_s14   ;;  %s724_s9 = smov %s531_s10 }
  0x38   : > { %p16_p10 = scmp.ge.s32.totalorder %s19_s14, 4   ;;  %s725_s10 = smov %s535_s11 }
  0x39   : > { %s726_s11 = smov %s653_s6  ;;  %s727_s12 = smov %s543_s13 }
  0x3a   : > { %s728_s13 = smov %s730_s27  ;;  %18 = sbr.rel (!%p16_p10) target bundleno = 7 (0x7), region = 78 }
  0x3f   :  { %239 = vsyncpa [#allocation3], 1 }
  0x40   :  { %241 = vsyncpa [#allocation3 + $0x1], 1 }
  0x41   :  { %242 = vsyncpa [#allocation6], 1 }
  0x42   :  { %243 = vsyncpa [#allocation4], 1 }
  0x43   :  { %245 = vsyncpa [#allocation4 + $0x1], 1 }

</bundles_post_ra>
